<compile_context>
chip_gen: v6e
topology: v6e:2x2x1
jax: 0.10.0
libtpu: 0.0.40
codegen_flags: <defaults>
</compile_context>

<pallas_src>
import functools
import math

import jax
import jax.numpy as jnp
from jax.experimental import pallas as pl
from jax.experimental.pallas import tpu as pltpu


# ---------------------------------------------------------------------------
# One-time parameter setup (plain JAX): sin-cos buffer, incl. pe/sqrt(d_model).
# ---------------------------------------------------------------------------
def _make_pe(d_model: int, max_len: int) -> jnp.ndarray:
    """Matches the PyTorch module's buffer, shape (max_len, d_model), f32."""
    position = jnp.arange(0, max_len, dtype=jnp.float32)[:, None]            # (L, 1)
    div_term = jnp.exp(
        jnp.arange(0, d_model, 2, dtype=jnp.float32) * (-math.log(10000.0) / d_model)
    )                                                                         # (ceil(D/2),)
    pe = jnp.zeros((max_len, d_model), dtype=jnp.float32)
    pe = pe.at[:, 0::2].set(jnp.sin(position * div_term))
    pe = pe.at[:, 1::2].set(jnp.cos(position * div_term[: d_model // 2]))     # odd-D safe
    pe = pe / (d_model ** 0.5)        # the module scales pe by 1/sqrt(d_model)
    return pe


# ---------------------------------------------------------------------------
# Generation-aware sizing (tile target, explicit VMEM limit, dispatch floor).
# ---------------------------------------------------------------------------
def _tpu_params():
    kind = ""
    try:
        kind = jax.devices()[0].device_kind.lower()
    except Exception:
        pass
    if "v7" in kind:
        # 64 MiB physical VMEM/TC; live set ~ 2*x_tile + 2*out_tile + pe <= 48 MiB.
        return dict(target_tile_bytes=8 << 20, vmem_limit_bytes=48 << 20,
                    min_pallas_bytes=4 << 20, core_parallel=True)
    if "v6" in kind:
        return dict(target_tile_bytes=8 << 20, vmem_limit_bytes=64 << 20,
                    min_pallas_bytes=2 << 20, core_parallel=False)
    if "v5" in kind and ("lite" in kind or "v5e" in kind):
        # 16 MiB default scoped VMEM -> must raise the limit to use 4 MiB tiles.
        return dict(target_tile_bytes=4 << 20, vmem_limit_bytes=48 << 20,
                    min_pallas_bytes=2 << 20, core_parallel=False)
    # Unknown generation: small tiles, keep the default scoped VMEM limit.
    return dict(target_tile_bytes=2 << 20, vmem_limit_bytes=None,
                min_pallas_bytes=2 << 20, core_parallel=False)


# ---------------------------------------------------------------------------
# Kernels.
# ---------------------------------------------------------------------------
def _pe_add_kernel_3d(x_ref, pe_ref, o_ref):
    # x_ref / o_ref: (TL, TN, D); pe_ref: (TL, 1, D), already in x.dtype.
    o_ref[...] = x_ref[...] + pe_ref[...]


def _pe_add_kernel_2d(n_rep, x_ref, pe_ref, o_ref):
    # x_ref / o_ref: (TL, N*D); pe_ref: (TL, D). Lane-replicate pe N times in
    # VMEM (XLU work, hidden under the HBM-bound DMA) -> pe HBM traffic is L*D.
    o_ref[...] = x_ref[...] + jnp.tile(pe_ref[...], (1, n_rep))


# ---------------------------------------------------------------------------
# Tiling heuristics.
# ---------------------------------------------------------------------------
def _choose_tiles_3d(L, N, D, itemsize, target_bytes, sub):
    """Pick (tile_l, tile_n) for the lane-dense 3-D path (D % 128 == 0)."""
    row_bytes = N * D * itemsize
    if row_bytes <= target_bytes:
        tl = min(L, max(1, target_bytes // row_bytes))
        if tl >= 8:
            tl = (tl // 8) * 8          # nicer DMA shape (not a layout requirement)
        return int(tl), N
    # One (N, D) row already exceeds the budget: tile N too (tn % sub == 0).
    if N >= sub:
        tn = max(sub, (target_bytes // (D * itemsize)) // sub * sub)
        tn = min(tn, (N // sub) * sub)
        return 1, int(tn)
    # N too small to split on sublanes: one full row per step.
    # TODO(synk): could additionally tile D (multiples of 128) for pathological
    # huge-D / tiny-N shapes; not needed for transformer-like inputs.
    return 1, N


# ---------------------------------------------------------------------------
# Pallas dispatch.
# ---------------------------------------------------------------------------
def _pe_add_pallas(x, pe_cast, *, params, tile_l=None, tile_n=None):
    L, N, D = x.shape
    itemsize = jnp.dtype(x.dtype).itemsize
    target = params["target_tile_bytes"]
    sub = 8 * max(1, 4 // itemsize)      # sublane multiple: 8 (f32), 16 (bf16), 32 (int8)

    if D % 128 == 0:
        # --- 3-D lane-dense path: lanes = D, pe HBM traffic stays ~L*D. ---
        auto_tl, auto_tn = _choose_tiles_3d(L, N, D, itemsize, target, sub)
        tl = auto_tl if tile_l is None else int(tile_l)
        tn = auto_tn if tile_n is None else int(tile_n)
        tl = max(1, min(tl, L))
        tn = max(1, min(tn, N))
        if tn != N:                      # partial-N blocks must be sublane aligned
            tn_aligned = (tn // sub) * sub
            tn = tn_aligned if tn_aligned >= sub else N
        grid = (pl.cdiv(L, tl), pl.cdiv(N, tn))
        x_op = x
        pe_op = pe_cast[:, None, :]                        # (max_len, 1, D), view-only
        in_specs = [
            pl.BlockSpec((tl, tn, D), lambda i, j: (i, j, 0)),
            pl.BlockSpec((tl, 1, D), lambda i, j: (i, 0, 0)),
        ]
        out_specs = pl.BlockSpec((tl, tn, D), lambda i, j: (i, j, 0))
        kernel = _pe_add_kernel_3d
        out_shape = jax.ShapeDtypeStruct((L, N, D), x.dtype)
        out_reshape = None
    else:
        # --- 2-D lane-dense fold: x viewed as (L, N*D) so output stores are
        # full-width vst even for small D; pe stays (.,D), replicated in-kernel. ---
        row_bytes = max(1, N * D * itemsize)
        tl = (target // row_bytes) if tile_l is None else int(tile_l)
        tl = max(1, min(tl, L))
        if L >= sub:
            tl = max(sub, (tl // sub) * sub)   # (tl, .) blocks need tl % sub == 0
            pe_op = pe_cast                    # (max_len, D); edge blocks are masked
        else:
            tl = L                             # single full-extent block
            pe_op = pe_cast[:L]                # match leading dims (tiny copy)
        grid = (pl.cdiv(L, tl),)
        x_op = x.reshape(L, N * D)             # contiguous -> metadata-only reshape
        in_specs = [
            pl.BlockSpec((tl, N * D), lambda i: (i, 0)),
            pl.BlockSpec((tl, D), lambda i: (i, 0)),
        ]
        out_specs = pl.BlockSpec((tl, N * D), lambda i: (i, 0))
        kernel = functools.partial(_pe_add_kernel_2d, N)
        out_shape = jax.ShapeDtypeStruct((L, N * D), x.dtype)
        out_reshape = (L, N, D)

    # Tiles are independent. On v7x route the L axis to CORE_PARALLEL so both
    # TensorCores' DMA queues drive HBM; elsewhere plain PARALLEL.
    sems = []
    for ax in range(len(grid)):
        if ax == 0 and params["core_parallel"] and grid[0] >= 2:
            sems.append(pltpu.CORE_PARALLEL)
        else:
            sems.append(pltpu.PARALLEL)
    cp_kwargs = dict(dimension_semantics=tuple(sems))
    if params["vmem_limit_bytes"] is not None:
        cp_kwargs["vmem_limit_bytes"] = params["vmem_limit_bytes"]

    out = pl.pallas_call(
        kernel,
        out_shape=out_shape,
        grid_spec=pltpu.PrefetchScalarGridSpec(
            num_scalar_prefetch=0,
            grid=grid,
            in_specs=in_specs,
            out_specs=out_specs,
        ),
        compiler_params=pltpu.CompilerParams(**cp_kwargs),
        # TODO(synk): on v7x, sweep pipeline_mode=pl.Buffered(3) on the x/out
        # specs once tiles are final (expected low-single-digit %).
    )(x_op, pe_op)

    if out_reshape is not None:
        out = out.reshape(out_reshape)          # contiguous -> metadata-only
    return out


def positional_encoding_forward(x, pe_full, *, use_pallas=None, tile_l=None, tile_n=None):
    """x: (L, N, D); pe_full: (max_len, D) f32 buffer. Returns (L, N, D) in x.dtype."""
    L, N, D = x.shape
    params = _tpu_params()
    if use_pallas is None:
        # Small adds are better fused by XLA than paying the custom-call +
        # per-grid-step overhead.
        use_pallas = (L * N * D * jnp.dtype(x.dtype).itemsize) >= params["min_pallas_bytes"]
    pe_cast = pe_full.astype(x.dtype)           # tiny (max_len, D) one-time cast
    if not use_pallas:
        return x + pe_cast[:L][:, None, :]
    return _pe_add_pallas(x, pe_cast, params=params, tile_l=tile_l, tile_n=tile_n)
    # TODO(synk): dropout with p > 0 would use pltpu.prng_seed /
    # pltpu.stateful_bernoulli; module default p=0.0 makes it an identity.


def _reference(x, pe_full):
    L = x.shape[0]
    return x + pe_full[:L].astype(x.dtype)[:, None, :]


if __name__ == "__main__":
    d_model = 32
    max_len = 128
    key = jax.random.PRNGKey(0)
    pe_full = _make_pe(d_model, max_len)
    k1, k2, k3, k4 = jax.random.split(key, 4)

    # 1) module-default small shape, 2-D lane-dense fold path, single tile (f32)
    x1 = jax.random.normal(k1, (8, 2, d_model), dtype=jnp.float32)           # LND
    out1 = jax.block_until_ready(positional_encoding_forward(x1, pe_full, use_pallas=True))
    ref1 = _reference(x1, pe_full)
    assert out1.shape == x1.shape and out1.dtype == x1.dtype
    assert jnp.allclose(out1, ref1, atol=1e-6), "mismatch vs reference (test 1)"

    # 2) multi-tile pipelined grid over L (tile_l=8 -> 4 steps)
    x2 = jax.random.normal(k2, (32, 2, d_model), dtype=jnp.float32)
    out2 = jax.block_until_ready(
        positional_encoding_forward(x2, pe_full, use_pallas=True, tile_l=8))
    assert jnp.allclose(out2, _reference(x2, pe_full), atol=1e-6), "mismatch (test 2)"

    # 3) bf16 activations (pe pre-cast once in the wrapper), 2 tiles of 16 rows
    x3 = jax.random.normal(k3, (32, 2, d_model), dtype=jnp.float32).astype(jnp.bfloat16)
    out3 = jax.block_until_ready(
        positional_encoding_forward(x3, pe_full, use_pallas=True, tile_l=16))
    assert out3.dtype == jnp.bfloat16
    assert jnp.allclose(out3.astype(jnp.float32),
                        _reference(x3, pe_full).astype(jnp.float32),
                        atol=1e-2), "mismatch vs reference (test 3, bf16)"

    # 4) lane-dense 3-D path (D % 128 == 0) with a 2x2 grid over (L, N)
    d_model2, max_len2 = 128, 64
    pe2 = _make_pe(d_model2, max_len2)
    x4 = jax.random.normal(k4, (16, 16, d_model2), dtype=jnp.float32)
    out4 = jax.block_until_ready(
        positional_encoding_forward(x4, pe2, use_pallas=True, tile_l=8, tile_n=8))
    assert jnp.allclose(out4, _reference(x4, pe2), atol=1e-6), "mismatch (test 4)"

    # 5) auto-dispatch: tiny input takes the fused XLA path and still matches
    out5 = positional_encoding_forward(x1, pe_full)
    assert jnp.allclose(out5, ref1, atol=1e-6), "mismatch vs reference (test 5)"

    print("KERNEL_OK")
</pallas_src>

<mosaic_0001>
module attributes {stable_mosaic.version = 11 : i64} {
  func.func @_pe_add_kernel_2d(%arg0: i32, %arg1: memref<8x64xf32, #tpu.memory_space<vmem>>, %arg2: memref<8x32xf32, #tpu.memory_space<vmem>>, %arg3: memref<8x64xf32, #tpu.memory_space<vmem>>) attributes {dimension_semantics = [#tpu.dimension_semantics<parallel>], iteration_bounds = array<i64: 1>, scalar_prefetch = 0 : i64, scratch_operands = 0 : i64, tpu.core_type = #tpu.core_type<tc>, window_params = [{transform_indices = @transform_0, window_bounds = array<i64: 8, 64>}, {transform_indices = @transform_1, window_bounds = array<i64: 8, 32>}, {transform_indices = @transform_2, window_bounds = array<i64: 8, 64>}]} {
    %c0 = arith.constant 0 : index
    %c0_0 = arith.constant 0 : index
    %0 = vector.load %arg1[%c0, %c0_0] : memref<8x64xf32, #tpu.memory_space<vmem>>, vector<8x64xf32>
    %c0_1 = arith.constant 0 : index
    %c0_2 = arith.constant 0 : index
    %1 = vector.load %arg2[%c0_1, %c0_2] : memref<8x32xf32, #tpu.memory_space<vmem>>, vector<8x32xf32>
    %2 = tpu.concatenate %1, %1 in 1 : vector<8x32xf32>, vector<8x32xf32> -> vector<8x64xf32>
    %3 = arith.addf %0, %2 : vector<8x64xf32>
    %c0_3 = arith.constant 0 : index
    %c0_4 = arith.constant 0 : index
    %4 = vector.load %arg3[%c0_3, %c0_4] : memref<8x64xf32, #tpu.memory_space<vmem>>, vector<8x64xf32>
    tpu.vector_store %arg3[%c0_3, %c0_4], %3 {strides = array<i32>} : memref<8x64xf32, #tpu.memory_space<vmem>>, vector<8x64xf32>,
    return
  }
  func.func @transform_0(%arg0: i32) -> (i32, i32) {
    %c0_i32 = arith.constant 0 : i32
    %c0_i32_0 = arith.constant 0 : i32
    return %arg0, %c0_i32 : i32, i32
  }
  func.func @transform_1(%arg0: i32) -> (i32, i32) {
    %c0_i32 = arith.constant 0 : i32
    %c0_i32_0 = arith.constant 0 : i32
    return %arg0, %c0_i32 : i32, i32
  }
  func.func @transform_2(%arg0: i32) -> (i32, i32) {
    %c0_i32 = arith.constant 0 : i32
    %c0_i32_0 = arith.constant 0 : i32
    return %arg0, %c0_i32 : i32, i32
  }
}

</mosaic_0001>

<bundles_post_ra>
// kernel: tpu_custom_call.1
= control target key start
LH: loop header
LB: loop body
LE: loop exit
PB: predicated region body
PF: predicated region fallthrough
CT: control target
= control target key end

     0   :  { %s87_s0 = inlined_call_operand.vmem [shape: f32[8,64], index: 0, kind: input, shape index: {}]   ;;  %s88_s1 = inlined_call_operand.vmem [shape: f32[128,32], index: 1, kind: input, shape index: {}]   ;;  %s89_s2 = inlined_call_operand.hbm [shape: f32[8,64], index: 2, kind: output, shape index: {}]  }
   0x1   :  { %v13_v0 = vld [vmem:[%s88_s1] sm:$0xff] }
   0x2   :  { %7 = vsyncpa [#allocation3], 0  ;;  %s61_s11 = smov 32   ;;  %vm18_vm0 = vcmask 261120   ;;  %v12_v1 = vld [vmem:[%s87_s0] sm:$0xff]  ;;  %s62_s14 = smov [#allocation2]  }
   0x3   :  { %15 = vrot.lane.b32.xlu0 %v13_v0, %s61_s11  ;;  %s29_s15 = sshll.u32 %s62_s14, 4  ;;  %vm21_vm1 = vcmask 523264   ;;  %s30_s15 = int_to_ptr.vmem [resolvable:$true] %s29_s15 }
   0x4   :  { %s39_s16 = scalar_lea.vmem %s30_s15, 128  ;;  %p44_p1 = scmp.lt.s32.totalorder %s30_s15, %s30_s15 }
   0x5   :  { %p40_p0 = scmp.ne.s32.totalorder %s30_s15, %s39_s16  ;;  %p45_p2 = scmp.lt.s32.totalorder %s39_s16, %s39_s16 }
   0x7   :  { %p46_p3 = por %p45_p2, %p44_p1 }
   0x9   :  { %p47_p4 = pnand %p46_p3, %p40_p0 }
  0x75   :  { %v16_v2 = vpop.permute.xlu0 %15 }
  0x76   :  { %v19_v3 = vsel %vm18_vm0, %v13_v0, %v16_v2 }
  0x77   :  { %v20_v4 = vadd.f32 %v19_v3, %v12_v1 }
  0x79   :  { %22 = vst.msk [vmem:[#allocation2] sm:$0xff] %vm21_vm1, %v20_v4 }
  0x7a   :  { %50 = shalt.err (!%p47_p4)
}
  0x7b   :  { %32 = dma.vmem_to_hbm [thread:$0]  %s30_s15, 128, %s89_s2, [#allocation3]  }
  0x7c   :  { %59 = dma.done.wait [#allocation3], 128  }
  0x7d   :  { %60 = vsyncadd [#allocation3], 4294967168 }
  0x7e   :  { %36 = vsyncpa [#allocation3], 1 }

</bundles_post_ra>
